<compile_context>
chip_gen: v6e
topology: v6e:2x2x1
jax: 0.10.0
libtpu: 0.0.40
codegen_flags: <defaults>
</compile_context>

<pallas_src>
import functools

import jax
import jax.numpy as jnp
from jax.experimental import pallas as pl
from jax.experimental.pallas import tpu as pltpu

ALPHA = 2  # FocalLoss.__init__ default
BETA = 4   # FocalLoss.__init__ default

LANES = 128
TM_MAX = 2048   # rows per tile; 2 inputs * 2 bufs * 1 MiB + 2 MiB acc ~= 6 MiB VMEM
MAX_CORES = 2   # megacore split (v7x); harmless / size-1 grid axis on v5e, v6e


def _focal_loss_kernel(p_ref, t_ref, loss_out_ref, npos_out_ref,
                       loss_acc, npos_acc, *, steps_per_core, tm, rows_valid):
    c = pl.program_id(0)
    i = pl.program_id(1)

    @pl.when(i == 0)
    def _init():
        loss_acc[...] = jnp.zeros_like(loss_acc)
        npos_acc[...] = jnp.zeros_like(npos_acc)

    p = p_ref[...].astype(jnp.float32)
    t = t_ref[...].astype(jnp.float32)

    # Rows of this tile that are globally valid.  Handles both the ragged last
    # tile (Pallas pads out-of-bounds reads with garbage) and clamped
    # duplicate tiles (see index_map clamp in the wrapper: rows_remaining <= 0
    # there, so the whole tile masks out).  Scalar math stays on the scalar
    # unit; vector side is a single int compare per element.
    row0 = (c * steps_per_core + i) * tm
    rows_remaining = rows_valid - row0
    row_iota = jax.lax.broadcasted_iota(jnp.int32, (tm, LANES), 0)
    row_ok = row_iota < rows_remaining

    is_pos = (t == 1.0) & row_ok
    is_neg = (t < 1.0) & row_ok          # sentinel t=2.0 hits neither branch
    contrib = is_pos | is_neg

    one_m_p = 1.0 - p
    one_m_t = 1.0 - t
    tt = one_m_t * one_m_t
    neg_w = tt * tt                      # (1 - t)**BETA as pure VPU multiplies

    # One log per element: log(p) for positives, log(1-p) for negatives.
    # Masked / garbage elements see log(1.0) * 0.0 -> exactly zero, no NaNs.
    a = jnp.where(contrib, jnp.where(is_pos, p, one_m_p), 1.0)
    w = jnp.where(contrib,
                  jnp.where(is_pos, one_m_p * one_m_p, p * p * neg_w),
                  0.0)                   # (1-p)**ALPHA  /  p**ALPHA * neg_w

    loss_acc[...] += jnp.log(a) * w      # = pos_loss + neg_loss contributions
    npos_acc[...] += is_pos.astype(jnp.float32)

    @pl.when(i == pl.num_programs(1) - 1)
    def _finalize():
        loss_out_ref[...] = jnp.sum(loss_acc[...], axis=0, keepdims=True)
        npos_out_ref[...] = jnp.sum(npos_acc[...], axis=0, keepdims=True)


@jax.jit
def focal_loss(prediction, target):
    """Pallas implementation of FocalLoss(alpha=2, beta=4).forward."""
    p_flat = prediction.reshape(-1)
    t_flat = target.reshape(-1)
    n = p_flat.shape[0]

    # Minimal lane padding (only when n % 128 != 0).  Sentinel target 2.0 makes
    # padded elements neither positive nor negative -> zero contribution; the
    # padded prediction 0.5 keeps log() arguments well-defined pre-mask.
    rem = n % LANES
    if rem:
        pad = LANES - rem
        p_flat = jnp.concatenate(
            [p_flat, jnp.full((pad,), 0.5, p_flat.dtype)])
        t_flat = jnp.concatenate(
            [t_flat, jnp.full((pad,), 2, t_flat.dtype)])

    rows = p_flat.shape[0] // LANES
    p2 = p_flat.reshape(rows, LANES)
    t2 = t_flat.reshape(rows, LANES)

    tm = rows if rows <= TM_MAX else TM_MAX
    total_steps = pl.cdiv(rows, tm)
    ncores = min(MAX_CORES, total_steps)
    steps_per_core = pl.cdiv(total_steps, ncores)

    def in_map(c, i):
        # Clamp so over-covering block indices stay in range; the in-kernel
        # row mask zeroes any duplicated / out-of-range rows.
        return (jnp.minimum(c * steps_per_core + i, total_steps - 1), 0)

    in_spec = pl.BlockSpec((tm, LANES), in_map)
    out_spec = pl.BlockSpec((None, 1, LANES), lambda c, i: (c, 0, 0))

    kernel = functools.partial(_focal_loss_kernel,
                               steps_per_core=steps_per_core,
                               tm=tm, rows_valid=rows)

    loss_part, npos_part = pl.pallas_call(
        kernel,
        out_shape=(jax.ShapeDtypeStruct((ncores, 1, LANES), jnp.float32),
                   jax.ShapeDtypeStruct((ncores, 1, LANES), jnp.float32)),
        grid_spec=pltpu.PrefetchScalarGridSpec(
            num_scalar_prefetch=0,
            grid=(ncores, steps_per_core),
            in_specs=[in_spec, in_spec],
            out_specs=[out_spec, out_spec],
            scratch_shapes=[
                pltpu.VMEM((tm, LANES), jnp.float32),
                pltpu.VMEM((tm, LANES), jnp.float32),
            ],
        ),
        compiler_params=pltpu.CompilerParams(
            dimension_semantics=("parallel", "arbitrary")),
    )(p2, t2)

    loss_sum = jnp.sum(loss_part)   # pos_loss + neg_loss
    npos = jnp.sum(npos_part)
    # pos_loss == 0 whenever npos == 0, so -loss_sum == -neg_loss there.
    return jnp.where(npos == 0.0, -loss_sum, -loss_sum / npos)


def focal_loss_ref(prediction, target):
    """Pure-JAX reference mirroring the PyTorch module."""
    p = prediction.astype(jnp.float32)
    t = target.astype(jnp.float32)
    pos_idx = (t == 1.0).astype(jnp.float32)
    neg_idx = (t < 1.0).astype(jnp.float32)
    neg_w = (1.0 - t) ** BETA
    pos_loss = jnp.sum(jnp.log(p) * (1.0 - p) ** ALPHA * pos_idx)
    neg_loss = jnp.sum(jnp.log(1.0 - p) * p ** ALPHA * neg_w * neg_idx)
    num_pos = jnp.sum(pos_idx)
    return jnp.where(num_pos == 0.0, -neg_loss, -(pos_loss + neg_loss) / num_pos)


if __name__ == "__main__":
    key = jax.random.PRNGKey(0)
    k1, k2, k3 = jax.random.split(key, 3)

    B, C, H, W = 2, 4, 16, 16  # small NCHW heatmap shapes
    # prediction: strictly inside (0, 1) like a sigmoid heatmap output
    prediction = jax.nn.sigmoid(jax.random.normal(k1, (B, C, H, W), jnp.float32))
    # target: gaussian-heatmap-like values in [0, 1) with a few exact 1.0 peaks
    target = jax.random.uniform(k2, (B, C, H, W), jnp.float32, 0.0, 0.9)
    peak_mask = jax.random.uniform(k3, (B, C, H, W)) > 0.97
    target = jnp.where(peak_mask, jnp.float32(1.0), target)

    out = focal_loss(prediction, target)
    jax.block_until_ready(out)

    ref = focal_loss_ref(prediction, target)
    assert jnp.allclose(out, ref, rtol=1e-5, atol=1e-5), (out, ref)
    print("KERNEL_OK")
</pallas_src>

<mosaic_0001>
module attributes {stable_mosaic.version = 11 : i64} {
  func.func @_focal_loss_kernel(%arg0: i32, %arg1: i32, %arg2: memref<16x128xf32, #tpu.memory_space<vmem>>, %arg3: memref<16x128xf32, #tpu.memory_space<vmem>>, %arg4: memref<1x1x128xf32, #tpu.memory_space<vmem>>, %arg5: memref<1x1x128xf32, #tpu.memory_space<vmem>>, %arg6: memref<16x128xf32, #tpu.memory_space<vmem>>, %arg7: memref<16x128xf32, #tpu.memory_space<vmem>>) attributes {dimension_semantics = [#tpu.dimension_semantics<parallel>, #tpu.dimension_semantics<arbitrary>], iteration_bounds = array<i64: 1, 1>, scalar_prefetch = 0 : i64, scratch_operands = 2 : i64, tpu.core_type = #tpu.core_type<tc>, window_params = [{transform_indices = @transform_0, window_bounds = array<i64: 16, 128>}, {transform_indices = @transform_1, window_bounds = array<i64: 16, 128>}, {transform_indices = @transform_2, window_bounds = array<i64: 1, 1, 128>}, {transform_indices = @transform_3, window_bounds = array<i64: 1, 1, 128>}]} {
    %c0_i32 = arith.constant 0 : i32
    %0 = arith.cmpi eq, %arg1, %c0_i32 : i32
    %1 = arith.extui %0 : i1 to i32
    %c0_i32_0 = arith.constant 0 : i32
    %2 = arith.cmpi ne, %1, %c0_i32_0 : i32
    scf.if %2 {
      %cst_20 = arith.constant 0.000000e+00 : f32
      %47 = vector.broadcast %cst_20 : f32 to vector<16x128xf32>
      %c0_21 = arith.constant 0 : index
      %c0_22 = arith.constant 0 : index
      %48 = vector.load %arg6[%c0_21, %c0_22] : memref<16x128xf32, #tpu.memory_space<vmem>>, vector<16x128xf32>
      tpu.vector_store %arg6[%c0_21, %c0_22], %47 {strides = array<i32>} : memref<16x128xf32, #tpu.memory_space<vmem>>, vector<16x128xf32>,
      %cst_23 = arith.constant 0.000000e+00 : f32
      %49 = vector.broadcast %cst_23 : f32 to vector<16x128xf32>
      %c0_24 = arith.constant 0 : index
      %c0_25 = arith.constant 0 : index
      %50 = vector.load %arg7[%c0_24, %c0_25] : memref<16x128xf32, #tpu.memory_space<vmem>>, vector<16x128xf32>
      tpu.vector_store %arg7[%c0_24, %c0_25], %49 {strides = array<i32>} : memref<16x128xf32, #tpu.memory_space<vmem>>, vector<16x128xf32>,
    } else {
    }
    %c0 = arith.constant 0 : index
    %c0_1 = arith.constant 0 : index
    %3 = vector.load %arg2[%c0, %c0_1] : memref<16x128xf32, #tpu.memory_space<vmem>>, vector<16x128xf32>
    %c0_2 = arith.constant 0 : index
    %c0_3 = arith.constant 0 : index
    %4 = vector.load %arg3[%c0_2, %c0_3] : memref<16x128xf32, #tpu.memory_space<vmem>>, vector<16x128xf32>
    %c1_i32 = arith.constant 1 : i32
    %5 = arith.muli %arg0, %c1_i32 : i32
    %6 = arith.addi %5, %arg1 : i32
    %c16_i32 = arith.constant 16 : i32
    %7 = arith.muli %6, %c16_i32 : i32
    %c16_i32_4 = arith.constant 16 : i32
    %8 = arith.subi %c16_i32_4, %7 : i32
    %9 = tpu.iota {dimensions = array<i32: 0>} : vector<16x128xi32>
    %10 = vector.broadcast %8 : i32 to vector<16x128xi32>
    %11 = arith.cmpi slt, %9, %10 : vector<16x128xi32>
    %cst = arith.constant 1.000000e+00 : f32
    %12 = vector.broadcast %cst : f32 to vector<16x128xf32>
    %13 = arith.cmpf oeq, %4, %12 : vector<16x128xf32>
    %14 = arith.andi %13, %11 : vector<16x128xi1>
    %cst_5 = arith.constant 1.000000e+00 : f32
    %15 = vector.broadcast %cst_5 : f32 to vector<16x128xf32>
    %16 = arith.cmpf olt, %4, %15 : vector<16x128xf32>
    %17 = arith.andi %16, %11 : vector<16x128xi1>
    %18 = arith.ori %14, %17 : vector<16x128xi1>
    %cst_6 = arith.constant 1.000000e+00 : f32
    %19 = vector.broadcast %cst_6 : f32 to vector<16x128xf32>
    %20 = arith.subf %19, %3 : vector<16x128xf32>
    %cst_7 = arith.constant 1.000000e+00 : f32
    %21 = vector.broadcast %cst_7 : f32 to vector<16x128xf32>
    %22 = arith.subf %21, %4 : vector<16x128xf32>
    %23 = arith.mulf %22, %22 : vector<16x128xf32>
    %24 = arith.mulf %23, %23 : vector<16x128xf32>
    %25 = arith.select %14, %3, %20 : vector<16x128xi1>, vector<16x128xf32>
    %cst_8 = arith.constant 1.000000e+00 : f32
    %26 = vector.broadcast %cst_8 : f32 to vector<16x128xf32>
    %27 = arith.select %18, %25, %26 : vector<16x128xi1>, vector<16x128xf32>
    %28 = arith.mulf %20, %20 : vector<16x128xf32>
    %29 = arith.mulf %3, %3 : vector<16x128xf32>
    %30 = arith.mulf %29, %24 : vector<16x128xf32>
    %31 = arith.select %14, %28, %30 : vector<16x128xi1>, vector<16x128xf32>
    %cst_9 = arith.constant 0.000000e+00 : f32
    %32 = vector.broadcast %cst_9 : f32 to vector<16x128xf32>
    %33 = arith.select %18, %31, %32 : vector<16x128xi1>, vector<16x128xf32>
    %c0_10 = arith.constant 0 : index
    %c0_11 = arith.constant 0 : index
    %34 = vector.load %arg6[%c0_10, %c0_11] : memref<16x128xf32, #tpu.memory_space<vmem>>, vector<16x128xf32>
    %35 = math.log %27 : vector<16x128xf32>
    %36 = arith.mulf %35, %33 : vector<16x128xf32>
    %37 = arith.addf %34, %36 : vector<16x128xf32>
    %c0_12 = arith.constant 0 : index
    %c0_13 = arith.constant 0 : index
    %38 = vector.load %arg6[%c0_12, %c0_13] : memref<16x128xf32, #tpu.memory_space<vmem>>, vector<16x128xf32>
    tpu.vector_store %arg6[%c0_12, %c0_13], %37 {strides = array<i32>} : memref<16x128xf32, #tpu.memory_space<vmem>>, vector<16x128xf32>,
    %c0_14 = arith.constant 0 : index
    %c0_15 = arith.constant 0 : index
    %39 = vector.load %arg7[%c0_14, %c0_15] : memref<16x128xf32, #tpu.memory_space<vmem>>, vector<16x128xf32>
    %40 = arith.extui %14 : vector<16x128xi1> to vector<16x128xi32>
    %41 = arith.sitofp %40 : vector<16x128xi32> to vector<16x128xf32>
    %42 = arith.addf %39, %41 : vector<16x128xf32>
    %c0_16 = arith.constant 0 : index
    %c0_17 = arith.constant 0 : index
    %43 = vector.load %arg7[%c0_16, %c0_17] : memref<16x128xf32, #tpu.memory_space<vmem>>, vector<16x128xf32>
    tpu.vector_store %arg7[%c0_16, %c0_17], %42 {strides = array<i32>} : memref<16x128xf32, #tpu.memory_space<vmem>>, vector<16x128xf32>,
    %c0_i32_18 = arith.constant 0 : i32
    %44 = arith.cmpi eq, %arg1, %c0_i32_18 : i32
    %45 = arith.extui %44 : i1 to i32
    %c0_i32_19 = arith.constant 0 : i32
    %46 = arith.cmpi ne, %45, %c0_i32_19 : i32
    scf.if %46 {
      %c0_20 = arith.constant 0 : index
      %c0_21 = arith.constant 0 : index
      %47 = vector.load %arg6[%c0_20, %c0_21] : memref<16x128xf32, #tpu.memory_space<vmem>>, vector<16x128xf32>
      %cst_22 = arith.constant dense<0.000000e+00> : vector<128xf32>
      %48 = vector.multi_reduction <add>, %47, %cst_22 [0] : vector<16x128xf32> to vector<128xf32>
      %49 = vector.shape_cast %48 : vector<128xf32> to vector<1x128xf32>
      %c0_23 = arith.constant 0 : index
      %c0_24 = arith.constant 0 : index
      %c0_25 = arith.constant 0 : index
      %50 = vector.load %arg4[%c0_23, %c0_24, %c0_25] : memref<1x1x128xf32, #tpu.memory_space<vmem>>, vector<1x1x128xf32>
      %51 = vector.shape_cast %50 : vector<1x1x128xf32> to vector<1x128xf32>
      %52 = vector.shape_cast %49 : vector<1x128xf32> to vector<1x1x128xf32>
      tpu.vector_store %arg4[%c0_23, %c0_24, %c0_25], %52 {strides = array<i32>} : memref<1x1x128xf32, #tpu.memory_space<vmem>>, vector<1x1x128xf32>,
      %c0_26 = arith.constant 0 : index
      %c0_27 = arith.constant 0 : index
      %53 = vector.load %arg7[%c0_26, %c0_27] : memref<16x128xf32, #tpu.memory_space<vmem>>, vector<16x128xf32>
      %cst_28 = arith.constant dense<0.000000e+00> : vector<128xf32>
      %54 = vector.multi_reduction <add>, %53, %cst_28 [0] : vector<16x128xf32> to vector<128xf32>
      %55 = vector.shape_cast %54 : vector<128xf32> to vector<1x128xf32>
      %c0_29 = arith.constant 0 : index
      %c0_30 = arith.constant 0 : index
      %c0_31 = arith.constant 0 : index
      %56 = vector.load %arg5[%c0_29, %c0_30, %c0_31] : memref<1x1x128xf32, #tpu.memory_space<vmem>>, vector<1x1x128xf32>
      %57 = vector.shape_cast %56 : vector<1x1x128xf32> to vector<1x128xf32>
      %58 = vector.shape_cast %55 : vector<1x128xf32> to vector<1x1x128xf32>
      tpu.vector_store %arg5[%c0_29, %c0_30, %c0_31], %58 {strides = array<i32>} : memref<1x1x128xf32, #tpu.memory_space<vmem>>, vector<1x1x128xf32>,
    } else {
    }
    return
  }
  func.func @transform_0(%arg0: i32, %arg1: i32) -> (i32, i32) {
    %c1_i32 = arith.constant 1 : i32
    %0 = arith.muli %arg0, %c1_i32 : i32
    %1 = arith.addi %0, %arg1 : i32
    %c0_i32 = arith.constant 0 : i32
    %2 = arith.minsi %1, %c0_i32 : i32
    %c0_i32_0 = arith.constant 0 : i32
    %c0_i32_1 = arith.constant 0 : i32
    return %2, %c0_i32_0 : i32, i32
  }
  func.func @transform_1(%arg0: i32, %arg1: i32) -> (i32, i32) {
    %c1_i32 = arith.constant 1 : i32
    %0 = arith.muli %arg0, %c1_i32 : i32
    %1 = arith.addi %0, %arg1 : i32
    %c0_i32 = arith.constant 0 : i32
    %2 = arith.minsi %1, %c0_i32 : i32
    %c0_i32_0 = arith.constant 0 : i32
    %c0_i32_1 = arith.constant 0 : i32
    return %2, %c0_i32_0 : i32, i32
  }
  func.func @transform_2(%arg0: i32, %arg1: i32) -> (i32, i32, i32) {
    %c0_i32 = arith.constant 0 : i32
    %c0_i32_0 = arith.constant 0 : i32
    %c0_i32_1 = arith.constant 0 : i32
    return %arg0, %c0_i32, %c0_i32_0 : i32, i32, i32
  }
  func.func @transform_3(%arg0: i32, %arg1: i32) -> (i32, i32, i32) {
    %c0_i32 = arith.constant 0 : i32
    %c0_i32_0 = arith.constant 0 : i32
    %c0_i32_1 = arith.constant 0 : i32
    return %arg0, %c0_i32, %c0_i32_0 : i32, i32, i32
  }
}

</mosaic_0001>

<bundles_post_ra>
// kernel: focal_loss.1
= control target key start
LH: loop header
LB: loop body
LE: loop exit
PB: predicated region body
PF: predicated region fallthrough
CT: control target
= control target key end

     0   :  { %v202_v16 = vmov 0.0   ;;  %s265_s0 = inlined_call_operand.vmem [shape: f32[16,128], index: 0, kind: input, shape index: {}]   ;;  %s266_s1 = inlined_call_operand.vmem [shape: f32[16,128], index: 1, kind: input, shape index: {}]   ;;  %s267_s3 = inlined_call_operand.vmem [shape: f32[1,1,128], index: 3, kind: output, shape index: {1}]   ;;  %s268_s2 = inlined_call_operand.vmem [shape: f32[1,1,128], index: 2, kind: output, shape index: {0}]  }
   0x1   :  { %v85_v0 = vld [vmem:[%s265_s0] sm:$0xff]  ;;  %v86_v1 = vld [vmem:[%s265_s0 + $0x8] sm:$0xff] }
   0x2   :  { %v87_v2 = vld [vmem:[%s266_s1] sm:$0xff]  ;;  %v88_v3 = vld [vmem:[%s266_s1 + $0x8] sm:$0xff]  ;;  %v108_v4 = vsub.f32 1.0, %v85_v0  ;;  %v109_v5 = vsub.f32 1.0, %v86_v1  ;;  %v122_v20 = vmul.f32 %v85_v0, %v85_v0  ;;  %v123_v23 = vmul.f32 %v86_v1, %v86_v1 }
   0x3   :  { %vm98_vm0 = vcmp.eq.f32.partialorder %v87_v2, 1.0  ;;  %vm102_vm1 = vcmp.lt.f32.partialorder %v87_v2, 1.0  ;;  %vm99_vm2 = vcmp.eq.f32.partialorder %v88_v3, 1.0  ;;  %vm103_vm3 = vcmp.lt.f32.partialorder %v88_v3, 1.0 }
   0x4   :  { %vm236_vm4 = vmor %vm98_vm0, %vm102_vm1  ;;  %v110_v7 = vsub.f32 1.0, %v87_v2  ;;  %v111_v8 = vsub.f32 1.0, %v88_v3  ;;  %v116_v10 = vsel %vm98_vm0, %v85_v0, %v108_v4  ;;  %v117_v11 = vsel %vm99_vm2, %v86_v1, %v109_v5 }
   0x5   :  { %vm241_vm5 = vmor %vm99_vm2, %vm103_vm3  ;;  %v118_v14 = vsel %vm236_vm4, %v116_v10, 1.0  ;;  %v195_v17 = vsel %vm98_vm0, 1.0, %v202_v16  ;;  %v196_v18 = vsel %vm99_vm2, 1.0, %v202_v16  ;;  %v120_v25 = vmul.f32 %v108_v4, %v108_v4 }
   0x6   :  { %v112_v12 = vmul.f32 %v110_v7, %v110_v7  ;;  %v113_v13 = vmul.f32 %v111_v8, %v111_v8  ;;  %v119_v15 = vsel %vm241_vm5, %v117_v11, 1.0  ;;  %198 = vlog2.f32 %v118_v14 }
   0x7   :  { %200 = vlog2.f32 %v119_v15  ;;  %v167_v21 = vadd.f32 %v196_v18, %v195_v17  ;;  %v121_v28 = vmul.f32 %v109_v5, %v109_v5 }
   0x8   :  { %v114_v19 = vmul.f32 %v112_v12, %v112_v12  ;;  %v115_v22 = vmul.f32 %v113_v13, %v113_v13 }
   0x9   :  { %v168_v24 = vrot.slane %v167_v21, 4 }
   0xa   :  { %v124_v26 = vmul.f32 %v122_v20, %v114_v19  ;;  %v125_v29 = vmul.f32 %v123_v23, %v115_v22 }
   0xb   :  { %v169_v27 = vadd.f32 %v168_v24, %v167_v21 }
   0xc   :  { %v126_v31 = vsel %vm98_vm0, %v120_v25, %v124_v26  ;;  %v127_v33 = vsel %vm99_vm2, %v121_v28, %v125_v29 }
   0xd   :  { %v170_v30 = vrot.slane %v169_v27, 2  ;;  %v128_v36 = vsel %vm236_vm4, %v126_v31, 0.0  ;;  %v129_v38 = vsel %vm241_vm5, %v127_v33, 0.0 }
   0xf   :  { %v171_v32 = vadd.f32 %v170_v30, %v169_v27 }
  0x11   :  { %v172_v34 = vrot.slane %v171_v32, 1 }
  0x13   :  { %v199_v35 = vpop.eup %198  ;;  %v173_v40 = vadd.f32 %v172_v34, %v171_v32 }
  0x14   :  { %v201_v37 = vpop.eup %200  ;;  %v133_v39 = vmul.f32 0.6931472, %v199_v35 }
  0x15   :  { %v135_v41 = vmul.f32 0.6931472, %v201_v37  ;;  %174 = vst [vmem:[%s267_s3] sm:$0x1] %v173_v40 }
  0x16   :  { %v136_v42 = vmul.f32 %v133_v39, %v128_v36 }
  0x17   :  { %v137_v43 = vmul.f32 %v135_v41, %v129_v38 }
  0x19   :  { %v157_v44 = vadd.f32 %v137_v43, %v136_v42 }
  0x1b   :  { %v158_v45 = vrot.slane %v157_v44, 4 }
  0x1d   :  { %v159_v46 = vadd.f32 %v158_v45, %v157_v44 }
  0x1f   :  { %v160_v47 = vrot.slane %v159_v46, 2 }
  0x21   :  { %v161_v48 = vadd.f32 %v160_v47, %v159_v46 }
  0x23   :  { %v162_v49 = vrot.slane %v161_v48, 1 }
  0x25   :  { %v163_v50 = vadd.f32 %v162_v49, %v161_v48 }
  0x27   :  { %164 = vst [vmem:[%s268_s2] sm:$0x1] %v163_v50 }

</bundles_post_ra>
